<compile_context>
chip_gen: v7x
topology: tpu7x:2x2x1
jax: 0.10.0
libtpu: 0.0.40
codegen_flags: <defaults>
</compile_context>

<pallas_src>
import math

import jax
import jax.numpy as jnp
from jax.experimental import pallas as pl
from jax.experimental.pallas import tpu as pltpu


# ----------------------------------------------------------------------------
# VMEM budgeting
# ----------------------------------------------------------------------------
def _vmem_budget_bytes():
    """(tile-sizing budget, vmem_limit_bytes) per TPU generation."""
    cap = None
    try:
        cap = int(pltpu.get_tpu_info().vmem_capacity_bytes)
    except Exception:
        cap = None
    if cap is None:
        # Conservative cross-generation fallback (safe on v5e/v6e/v7x).
        return 24 << 20, 48 << 20
    if cap >= (96 << 20):        # v5e / v6e: 128 MiB physical VMEM
        return 28 << 20, 56 << 20
    else:                        # v7x: 64 MiB per TensorCore
        return 36 << 20, 52 << 20


def _largest_tile(S, cap, mult):
    """Largest multiple of `mult` dividing S that is <= cap; S if S <= cap or
    no such divisor exists (full-extent blocks are always layout-legal)."""
    if S <= cap:
        return S
    t = (cap // mult) * mult
    while t >= mult:
        if S % t == 0:
            return t
        t -= mult
    return S


def _choose_tiles_weights(H, S, D, itemsize, w_itemsize, budget):
    """(head_block, query_tile) for the weights-returning kernel."""
    tq = _largest_tile(S, 256, 8)

    def step_bytes(hb, tq_):
        kv = 2 * hb * S * D * itemsize            # K + V tiles
        q_ctx = 2 * hb * tq_ * D * itemsize       # Q in + context out
        attn = hb * tq_ * S * w_itemsize          # weights output tile
        msk = hb * tq_ * S                        # int8 mask tile (upper bound)
        scratch = 4 * hb * tq_ * S * 4            # live (TQ,S) f32 temporaries
        return 2 * (kv + q_ctx + attn + msk) + scratch   # x2: double-buffering

    while step_bytes(1, tq) > budget and tq > 8:
        nt = _largest_tile(S, tq // 2, 8)
        if nt == S or nt >= tq:
            break
        tq = nt

    hb = 1
    while hb * 2 <= H and H % (hb * 2) == 0 and step_bytes(hb * 2, tq) <= budget:
        hb *= 2
    return hb, tq


def _choose_tiles_flash(H, S, D, itemsize, budget):
    """(head_block, query_tile, key_tile) for the context-only flash kernel."""
    tq = _largest_tile(S, 256, 8)
    tk = _largest_tile(S, 512, 128)

    def step_bytes(hb, tq_, tk_):
        kv = 2 * hb * tk_ * D * itemsize
        q_ctx = 2 * hb * tq_ * D * itemsize
        msk = hb * tq_ * tk_
        scratch = hb * tq_ * (D + 2) * 4 + 3 * hb * tq_ * tk_ * 4
        return 2 * (kv + q_ctx + msk) + scratch

    while step_bytes(1, tq, tk) > budget and tk > 128:
        nt = _largest_tile(S, tk // 2, 128)
        if nt == S or nt >= tk:
            break
        tk = nt
    while step_bytes(1, tq, tk) > budget and tq > 8:
        nt = _largest_tile(S, tq // 2, 8)
        if nt == S or nt >= tq:
            break
        tq = nt

    hb = 1
    while (hb * 2 <= H and H % (hb * 2) == 0
           and step_bytes(hb * 2, tq, tk) <= budget):
        hb *= 2
    return hb, tq, tk


# ----------------------------------------------------------------------------
# Kernels
# ----------------------------------------------------------------------------
def _make_weights_kernel(has_mask, mm_dtype):
    """Kernel that returns (context, attention_weights); K/V full-S resident."""

    def kernel(*refs):
        i = 0
        q_ref = refs[i]; i += 1                       # (1, HB, TQ, D)
        k_ref = refs[i]; i += 1                       # (1, HB, S,  D)
        v_ref = refs[i]; i += 1                       # (1, HB, S,  D)
        mask_ref = None
        if has_mask:
            mask_ref = refs[i]; i += 1                # (1, HBm, TQm, S) int8
        ctx_ref = refs[i]; i += 1                     # (1, HB, TQ, D)
        attn_ref = refs[i]                            # (1, HB, TQ, S)

        q = q_ref[0]
        k = k_ref[0]
        v = v_ref[0]
        if mm_dtype is not None:
            q = q.astype(mm_dtype)
            k = k.astype(mm_dtype)

        d_k = q_ref.shape[-1]
        inv_sqrt_dk = 1.0 / math.sqrt(d_k)

        # scores = Q @ K^T (contract D directly, batched over packed heads).
        scores = jax.lax.dot_general(
            q, k, (((2,), (2,)), ((0,), (0,))),
            preferred_element_type=jnp.float32) * inv_sqrt_dk    # (HB, TQ, S)

        if has_mask:
            m = mask_ref[0]                           # broadcasts over HB/TQ
            scores = jnp.where(m == 0, jnp.float32(-1e9), scores)

        scores_max = jnp.max(scores, axis=-1, keepdims=True)
        unnorm = jnp.exp(scores - scores_max)
        denom = jnp.sum(unnorm, axis=-1, keepdims=True)
        weights = unnorm * pl.reciprocal(denom, approx=False)

        pv_dtype = mm_dtype if mm_dtype is not None else v.dtype
        context = jax.lax.dot_general(
            weights.astype(pv_dtype), v.astype(pv_dtype),
            (((2,), (1,)), ((0,), (0,))),
            preferred_element_type=jnp.float32)       # (HB, TQ, D)

        ctx_ref[0] = context.astype(ctx_ref.dtype)
        attn_ref[0] = weights.astype(attn_ref.dtype)

    return kernel


def _make_flash_kernel(has_mask, mm_dtype):
    """Context-only kernel: key axis tiled on the grid, online softmax."""

    def kernel(*refs):
        i = 0
        q_ref = refs[i]; i += 1                       # (1, HB, TQ, D)
        k_ref = refs[i]; i += 1                       # (1, HB, TK, D)
        v_ref = refs[i]; i += 1                       # (1, HB, TK, D)
        mask_ref = None
        if has_mask:
            mask_ref = refs[i]; i += 1                # (1, HBm, TQm, TK) int8
        ctx_ref = refs[i]; i += 1                     # (1, HB, TQ, D)
        m_sc = refs[i]; i += 1                        # (HB, TQ, 1) f32
        l_sc = refs[i]; i += 1                        # (HB, TQ, 1) f32
        acc_sc = refs[i]                              # (HB, TQ, D) f32

        ki = pl.program_id(3)

        @pl.when(ki == 0)
        def _():
            m_sc[...] = jnp.full(m_sc.shape, -jnp.inf, dtype=m_sc.dtype)
            l_sc[...] = jnp.zeros(l_sc.shape, dtype=l_sc.dtype)
            acc_sc[...] = jnp.zeros(acc_sc.shape, dtype=acc_sc.dtype)

        q = q_ref[0]
        k = k_ref[0]
        v = v_ref[0]
        if mm_dtype is not None:
            q = q.astype(mm_dtype)
            k = k.astype(mm_dtype)

        d_k = q_ref.shape[-1]
        inv_sqrt_dk = 1.0 / math.sqrt(d_k)

        s = jax.lax.dot_general(
            q, k, (((2,), (2,)), ((0,), (0,))),
            preferred_element_type=jnp.float32) * inv_sqrt_dk    # (HB, TQ, TK)

        if has_mask:
            m = mask_ref[0]
            s = jnp.where(m == 0, jnp.float32(-1e9), s)

        m_prev = m_sc[...]
        m_new = jnp.maximum(m_prev, jnp.max(s, axis=-1, keepdims=True))
        alpha = jnp.exp(m_prev - m_new)
        p = jnp.exp(s - m_new)

        pv_dtype = mm_dtype if mm_dtype is not None else v.dtype
        pv = jax.lax.dot_general(
            p.astype(pv_dtype), v.astype(pv_dtype),
            (((2,), (1,)), ((0,), (0,))),
            preferred_element_type=jnp.float32)       # (HB, TQ, D)

        l_sc[...] = alpha * l_sc[...] + jnp.sum(p, axis=-1, keepdims=True)
        acc_sc[...] = alpha * acc_sc[...] + pv
        m_sc[...] = m_new

        @pl.when(ki == pl.num_programs(3) - 1)
        def _():
            # Reciprocal of the (HB,TQ,1) denominator applied to the (HB,TQ,D)
            # accumulator (never to an (HB,TQ,S) weights slab).
            ctx_ref[0] = (acc_sc[...] *
                          pl.reciprocal(l_sc[...], approx=False)
                          ).astype(ctx_ref.dtype)

    return kernel


# ----------------------------------------------------------------------------
# Wrapper
# ----------------------------------------------------------------------------
def scaled_dot_product_attention(Q, K, V, mask=None, *, return_weights=True,
                                 weights_dtype=jnp.float32, matmul_dtype=None):
    """Pallas implementation of ScaledDotProductAttention.forward.

    Q, K, V: [B, H, S, D].  mask: None or broadcastable to [B, H, S, S]
    (zero entries masked with -1e9).  Returns (context, attention_weights),
    or just context when return_weights=False (flash path: no S^2 writeback,
    key axis tiled, VMEM independent of S).
    """
    B, H, S, D = Q.shape
    assert K.shape == (B, H, S, D) and V.shape == (B, H, S, D)

    budget, vmem_limit = _vmem_budget_bytes()
    itemsize = jnp.dtype(Q.dtype).itemsize

    has_mask = mask is not None
    if has_mask:
        m = jnp.asarray(mask)
        assert m.ndim <= 4, "mask must be broadcastable to [B, H, S, S]"
        m = m.reshape((1,) * (4 - m.ndim) + m.shape)
        mb, mh, mq, mk = m.shape
        assert mb in (1, B) and mh in (1, H) and mq in (1, S) and mk in (1, S)
        if mk != S:                     # only the key dim is ever materialized
            m = jnp.broadcast_to(m, (mb, mh, mq, S))
        m_i8 = (m != 0).astype(jnp.int8)
        b_full, h_full, q_full = (mb == B), (mh == H), (mq == S)

    if return_weights:
        hb, tq = _choose_tiles_weights(
            H, S, D, itemsize, jnp.dtype(weights_dtype).itemsize, budget)
        grid = (B, H // hb, S // tq)

        q_spec = pl.BlockSpec((1, hb, tq, D), lambda b, h, qi: (b, h, qi, 0))
        kv_spec = pl.BlockSpec((1, hb, S, D), lambda b, h, qi: (b, h, 0, 0))
        attn_spec = pl.BlockSpec((1, hb, tq, S), lambda b, h, qi: (b, h, qi, 0))

        in_specs = [q_spec, kv_spec, kv_spec]
        args = [Q, K, V]
        if has_mask:
            hbm = hb if h_full else 1
            tqm = tq if q_full else 1
            mask_spec = pl.BlockSpec(
                (1, hbm, tqm, S),
                lambda b, h, qi: (b if b_full else 0, h if h_full else 0,
                                  qi if q_full else 0, 0))
            in_specs.append(mask_spec)
            args.append(m_i8)

        kernel = _make_weights_kernel(has_mask, matmul_dtype)
        out_shape = (jax.ShapeDtypeStruct((B, H, S, D), Q.dtype),
                     jax.ShapeDtypeStruct((B, H, S, S), weights_dtype))
        out_specs = [q_spec, attn_spec]
        scratch = []
        # qi "arbitrary": megacore shards on batch/head, keeping K/V blocks
        # disjoint per TensorCore and resident across the qi loop.
        dims = ("parallel", "parallel", "arbitrary")
    else:
        hb, tq, tk = _choose_tiles_flash(H, S, D, itemsize, budget)
        grid = (B, H // hb, S // tq, S // tk)

        q_spec = pl.BlockSpec((1, hb, tq, D),
                              lambda b, h, qi, ki: (b, h, qi, 0))
        kv_spec = pl.BlockSpec((1, hb, tk, D),
                               lambda b, h, qi, ki: (b, h, ki, 0))

        in_specs = [q_spec, kv_spec, kv_spec]
        args = [Q, K, V]
        if has_mask:
            hbm = hb if h_full else 1
            tqm = tq if q_full else 1
            mask_spec = pl.BlockSpec(
                (1, hbm, tqm, tk),
                lambda b, h, qi, ki: (b if b_full else 0, h if h_full else 0,
                                      qi if q_full else 0, ki))
            in_specs.append(mask_spec)
            args.append(m_i8)

        kernel = _make_flash_kernel(has_mask, matmul_dtype)
        out_shape = jax.ShapeDtypeStruct((B, H, S, D), Q.dtype)
        out_specs = q_spec
        scratch = [pltpu.VMEM((hb, tq, 1), jnp.float32),
                   pltpu.VMEM((hb, tq, 1), jnp.float32),
                   pltpu.VMEM((hb, tq, D), jnp.float32)]
        dims = ("parallel", "parallel", "arbitrary", "arbitrary")

    return pl.pallas_call(
        kernel,
        out_shape=out_shape,
        grid=grid,
        in_specs=in_specs,
        out_specs=out_specs,
        scratch_shapes=scratch,
        compiler_params=pltpu.CompilerParams(
            dimension_semantics=dims,
            vmem_limit_bytes=vmem_limit),
    )(*args)


# ----------------------------------------------------------------------------
# Reference + tests
# ----------------------------------------------------------------------------
def _reference(Q, K, V, mask=None):
    d_k = Q.shape[-1]
    scores = jnp.einsum("bhqd,bhkd->bhqk", Q, K) / math.sqrt(d_k)
    if mask is not None:
        scores = jnp.where(mask == 0, -1e9, scores)
    weights = jax.nn.softmax(scores, axis=-1)
    context = jnp.einsum("bhqk,bhkd->bhqd", weights, V)
    return context, weights


if __name__ == "__main__":
    key = jax.random.PRNGKey(0)

    # --- small shapes implied by the module (B=2, H=4, S=8, D=32) ---
    B, H, S, D = 2, 4, 8, 32
    kq, kk, kv, km = jax.random.split(key, 4)
    Q = jax.random.normal(kq, (B, H, S, D), dtype=jnp.float32)
    K = jax.random.normal(kk, (B, H, S, D), dtype=jnp.float32)
    V = jax.random.normal(kv, (B, H, S, D), dtype=jnp.float32)
    mask_full = (jax.random.uniform(km, (B, H, S, S)) > 0.2).astype(jnp.float32)
    mask_pad = (jax.random.uniform(km, (B, 1, 1, S)) > 0.2).astype(jnp.float32)

    # mask=None path
    ctx0, w0 = scaled_dot_product_attention(Q, K, V)
    jax.block_until_ready((ctx0, w0))
    rc0, rw0 = _reference(Q, K, V, None)
    assert jnp.allclose(ctx0, rc0, atol=1e-5, rtol=1e-5)
    assert jnp.allclose(w0, rw0, atol=1e-5, rtol=1e-5)

    # full (B, H, S, S) mask
    ctx1, w1 = scaled_dot_product_attention(Q, K, V, mask_full)
    jax.block_until_ready((ctx1, w1))
    rc1, rw1 = _reference(Q, K, V, mask_full)
    assert jnp.allclose(ctx1, rc1, atol=1e-5, rtol=1e-5)
    assert jnp.allclose(w1, rw1, atol=1e-5, rtol=1e-5)

    # key-padding mask (B,1,1,S): batch/head/query broadcast live in index_map
    ctx2, w2 = scaled_dot_product_attention(Q, K, V, mask_pad)
    jax.block_until_ready((ctx2, w2))
    rc2, rw2 = _reference(Q, K, V, mask_pad)
    assert jnp.allclose(ctx2, rc2, atol=1e-5, rtol=1e-5)
    assert jnp.allclose(w2, rw2, atol=1e-5, rtol=1e-5)

    # context-only fast path (flash kernel, no S^2 weights writeback)
    ctx3 = scaled_dot_product_attention(Q, K, V, mask_full, return_weights=False)
    jax.block_until_ready(ctx3)
    assert jnp.allclose(ctx3, rc1, atol=1e-5, rtol=1e-5)

    ctx3b = scaled_dot_product_attention(Q, K, V, return_weights=False)
    jax.block_until_ready(ctx3b)
    assert jnp.allclose(ctx3b, rc0, atol=1e-5, rtol=1e-5)

    # opt-in bf16 MXU path (loose tolerance — bf16 operands, f32 accumulate)
    ctx3c = scaled_dot_product_attention(Q, K, V, mask_full,
                                         return_weights=False,
                                         matmul_dtype=jnp.bfloat16)
    jax.block_until_ready(ctx3c)
    assert jnp.allclose(ctx3c, rc1, atol=5e-2, rtol=5e-2)

    # --- moderate shape exercising query tiling and key tiling (flash) ---
    B2, H2, S2, D2 = 1, 2, 1024, 64
    k1, k2, k3 = jax.random.split(key, 3)
    Q2 = jax.random.normal(k1, (B2, H2, S2, D2), dtype=jnp.float32)
    K2 = jax.random.normal(k2, (B2, H2, S2, D2), dtype=jnp.float32)
    V2 = jax.random.normal(k3, (B2, H2, S2, D2), dtype=jnp.float32)
    mask_pad2 = (jax.random.uniform(km, (B2, 1, 1, S2)) > 0.2).astype(jnp.float32)

    ctx4, w4 = scaled_dot_product_attention(Q2, K2, V2)
    jax.block_until_ready((ctx4, w4))
    rc4, rw4 = _reference(Q2, K2, V2, None)
    assert jnp.allclose(ctx4, rc4, atol=5e-3, rtol=5e-2)
    assert jnp.allclose(w4, rw4, atol=1e-3, rtol=5e-2)

    ctx5 = scaled_dot_product_attention(Q2, K2, V2, mask_pad2,
                                        return_weights=False)
    jax.block_until_ready(ctx5)
    rc5, _ = _reference(Q2, K2, V2, mask_pad2)
    assert jnp.allclose(ctx5, rc5, atol=5e-3, rtol=5e-2)

    print("KERNEL_OK")
</pallas_src>

<mosaic_0001>
module attributes {stable_mosaic.version = 11 : i64} {
  func.func @kernel(%arg0: i32, %arg1: i32, %arg2: i32, %arg3: memref<1x4x8x32xf32, #tpu.memory_space<vmem>>, %arg4: memref<1x4x8x32xf32, #tpu.memory_space<vmem>>, %arg5: memref<1x4x8x32xf32, #tpu.memory_space<vmem>>, %arg6: memref<1x4x8x32xf32, #tpu.memory_space<vmem>>, %arg7: memref<1x4x8x8xf32, #tpu.memory_space<vmem>>) attributes {dimension_semantics = [#tpu.dimension_semantics<parallel>, #tpu.dimension_semantics<parallel>, #tpu.dimension_semantics<arbitrary>], iteration_bounds = array<i64: 2, 1, 1>, scalar_prefetch = 0 : i64, scratch_operands = 0 : i64, tpu.core_type = #tpu.core_type<tc>, window_params = [{transform_indices = @transform_0, window_bounds = array<i64: 1, 4, 8, 32>}, {transform_indices = @transform_1, window_bounds = array<i64: 1, 4, 8, 32>}, {transform_indices = @transform_2, window_bounds = array<i64: 1, 4, 8, 32>}, {transform_indices = @transform_3, window_bounds = array<i64: 1, 4, 8, 32>}, {transform_indices = @transform_4, window_bounds = array<i64: 1, 4, 8, 8>}]} {
    %c0 = arith.constant 0 : index
    %c0_0 = arith.constant 0 : index
    %c0_1 = arith.constant 0 : index
    %c0_2 = arith.constant 0 : index
    %0 = vector.load %arg3[%c0, %c0_0, %c0_1, %c0_2] : memref<1x4x8x32xf32, #tpu.memory_space<vmem>>, vector<1x4x8x32xf32>
    %1 = vector.shape_cast %0 : vector<1x4x8x32xf32> to vector<4x8x32xf32>
    %c0_3 = arith.constant 0 : index
    %c0_4 = arith.constant 0 : index
    %c0_5 = arith.constant 0 : index
    %c0_6 = arith.constant 0 : index
    %2 = vector.load %arg4[%c0_3, %c0_4, %c0_5, %c0_6] : memref<1x4x8x32xf32, #tpu.memory_space<vmem>>, vector<1x4x8x32xf32>
    %3 = vector.shape_cast %2 : vector<1x4x8x32xf32> to vector<4x8x32xf32>
    %c0_7 = arith.constant 0 : index
    %c0_8 = arith.constant 0 : index
    %c0_9 = arith.constant 0 : index
    %c0_10 = arith.constant 0 : index
    %4 = vector.load %arg5[%c0_7, %c0_8, %c0_9, %c0_10] : memref<1x4x8x32xf32, #tpu.memory_space<vmem>>, vector<1x4x8x32xf32>
    %5 = vector.shape_cast %4 : vector<1x4x8x32xf32> to vector<4x8x32xf32>
    %cst = arith.constant dense<0.000000e+00> : vector<4x8x8xf32>
    %6 = tpu.matmul %1, %3, %cst {dimension_numbers = #tpu.dot_dimension_numbers<[2], [2], [1], [1], [0, 0, 0, 1, 1, 1], [0], [0]>} : vector<4x8x32xf32>, vector<4x8x32xf32>, vector<4x8x8xf32> -> vector<4x8x8xf32>
    %cst_11 = arith.constant 0.176776692 : f32
    %7 = vector.broadcast %cst_11 : f32 to vector<4x8x8xf32>
    %8 = arith.mulf %6, %7 : vector<4x8x8xf32>
    %cst_12 = arith.constant dense<0xFF800000> : vector<4x8xf32>
    %9 = vector.multi_reduction <maximumf>, %8, %cst_12 [2] : vector<4x8x8xf32> to vector<4x8xf32>
    %10 = vector.shape_cast %9 : vector<4x8xf32> to vector<4x8x1xf32>
    %11 = vector.broadcast %10 : vector<4x8x1xf32> to vector<4x8x8xf32>
    %12 = arith.subf %8, %11 : vector<4x8x8xf32>
    %13 = math.exp %12 : vector<4x8x8xf32>
    %cst_13 = arith.constant dense<0.000000e+00> : vector<4x8xf32>
    %14 = vector.multi_reduction <add>, %13, %cst_13 [2] : vector<4x8x8xf32> to vector<4x8xf32>
    %15 = vector.shape_cast %14 : vector<4x8xf32> to vector<4x8x1xf32>
    %16 = tpu.reciprocal %15 : vector<4x8x1xf32> -> vector<4x8x1xf32>
    %17 = vector.broadcast %16 : vector<4x8x1xf32> to vector<4x8x8xf32>
    %18 = arith.mulf %13, %17 : vector<4x8x8xf32>
    %cst_14 = arith.constant dense<0.000000e+00> : vector<4x8x32xf32>
    %19 = tpu.matmul %18, %5, %cst_14 {dimension_numbers = #tpu.dot_dimension_numbers<[2], [1], [1], [2], [0, 0, 0, 1, 1, 2], [0], [0]>} : vector<4x8x8xf32>, vector<4x8x32xf32>, vector<4x8x32xf32> -> vector<4x8x32xf32>
    %c0_15 = arith.constant 0 : index
    %c0_16 = arith.constant 0 : index
    %c0_17 = arith.constant 0 : index
    %c0_18 = arith.constant 0 : index
    %20 = vector.load %arg6[%c0_15, %c0_16, %c0_17, %c0_18] : memref<1x4x8x32xf32, #tpu.memory_space<vmem>>, vector<1x4x8x32xf32>
    %21 = vector.shape_cast %20 : vector<1x4x8x32xf32> to vector<4x8x32xf32>
    %22 = vector.shape_cast %19 : vector<4x8x32xf32> to vector<1x4x8x32xf32>
    tpu.vector_store %arg6[%c0_15, %c0_16, %c0_17, %c0_18], %22 {strides = array<i32>} : memref<1x4x8x32xf32, #tpu.memory_space<vmem>>, vector<1x4x8x32xf32>,
    %c0_19 = arith.constant 0 : index
    %c0_20 = arith.constant 0 : index
    %c0_21 = arith.constant 0 : index
    %c0_22 = arith.constant 0 : index
    %23 = vector.load %arg7[%c0_19, %c0_20, %c0_21, %c0_22] : memref<1x4x8x8xf32, #tpu.memory_space<vmem>>, vector<1x4x8x8xf32>
    %24 = vector.shape_cast %23 : vector<1x4x8x8xf32> to vector<4x8x8xf32>
    %25 = vector.shape_cast %18 : vector<4x8x8xf32> to vector<1x4x8x8xf32>
    tpu.vector_store %arg7[%c0_19, %c0_20, %c0_21, %c0_22], %25 {strides = array<i32>} : memref<1x4x8x8xf32, #tpu.memory_space<vmem>>, vector<1x4x8x8xf32>,
    return
  }
  func.func @transform_0(%arg0: i32, %arg1: i32, %arg2: i32) -> (i32, i32, i32, i32) {
    %c0_i32 = arith.constant 0 : i32
    %c0_i32_0 = arith.constant 0 : i32
    return %arg0, %arg1, %arg2, %c0_i32 : i32, i32, i32, i32
  }
  func.func @transform_1(%arg0: i32, %arg1: i32, %arg2: i32) -> (i32, i32, i32, i32) {
    %c0_i32 = arith.constant 0 : i32
    %c0_i32_0 = arith.constant 0 : i32
    %c0_i32_1 = arith.constant 0 : i32
    return %arg0, %arg1, %c0_i32, %c0_i32_0 : i32, i32, i32, i32
  }
  func.func @transform_2(%arg0: i32, %arg1: i32, %arg2: i32) -> (i32, i32, i32, i32) {
    %c0_i32 = arith.constant 0 : i32
    %c0_i32_0 = arith.constant 0 : i32
    %c0_i32_1 = arith.constant 0 : i32
    return %arg0, %arg1, %c0_i32, %c0_i32_0 : i32, i32, i32, i32
  }
  func.func @transform_3(%arg0: i32, %arg1: i32, %arg2: i32) -> (i32, i32, i32, i32) {
    %c0_i32 = arith.constant 0 : i32
    %c0_i32_0 = arith.constant 0 : i32
    return %arg0, %arg1, %arg2, %c0_i32 : i32, i32, i32, i32
  }
  func.func @transform_4(%arg0: i32, %arg1: i32, %arg2: i32) -> (i32, i32, i32, i32) {
    %c0_i32 = arith.constant 0 : i32
    %c0_i32_0 = arith.constant 0 : i32
    return %arg0, %arg1, %arg2, %c0_i32 : i32, i32, i32, i32
  }
}

</mosaic_0001>

<bundles_post_ra>
// kernel: tpu_custom_call.1
= control target key start
LH: loop header
LB: loop body
LE: loop exit
PB: predicated region body
PF: predicated region fallthrough
CT: control target
= control target key end

     0   :  { %s2064_s0 = inlined_call_operand.hbm [shape: f32[2,4,8,32], index: 0, kind: input, shape index: {}]   ;;  %s2065_s1 = inlined_call_operand.hbm [shape: f32[2,4,8,32], index: 1, kind: input, shape index: {}]   ;;  %s2066_s2 = inlined_call_operand.hbm [shape: f32[2,4,8,32], index: 2, kind: input, shape index: {}]   ;;  %s2067_s3 = inlined_call_operand.hbm [shape: f32[2,4,8,32], index: 3, kind: output, shape index: {0}]   ;;  %s2068_s4 = inlined_call_operand.hbm [shape: f32[2,4,8,8], index: 4, kind: output, shape index: {1}]  }
   0x1   :  { %2080 = sst [smem:[#allocation19_spill]] %s2065_s1 }
   0x2   :  { %10 = vsyncpa [#allocation3], 0 }
   0x3   :  { %12 = vsyncpa [#allocation3 + $0x1], 0 }
   0x4   :  { %13 = vsyncpa [#allocation6], 0 }
   0x5   :  { %15 = vsyncpa [#allocation6 + $0x1], 0 }
   0x6   :  { %16 = vsyncpa [#allocation4], 0 }
   0x7   :  { %18 = vsyncpa [#allocation4 + $0x1], 0 }
   0x8   :  { %19 = vsyncpa [#allocation10], 0 }
   0x9   :  { %21 = vsyncpa [#allocation10 + $0x1], 0  ;;  %s1680_s15 = smov 0   ;;  %s1682_s16 = smov 0  }
   0xa   :  { %s1684_s17 = smov 0   ;;  %s1686_s18 = smov 0  }
   0xb   :  { %s1688_s19 = smov 0   ;;  %s1690_s20 = smov 0  }
   0xc LB: > { %2081 = sst [smem:[#allocation15_spill]] %s1638_s19  ;;  %s1711_s21 = sadd.s32 4294967295, %s1642_s20   ;;  %s1642_s20 = sphi %s1690_s20, %s27_s20   ;;  %s1638_s19 = sphi %s1688_s19, %s2106_s19   ;;  %s1634_s18 = sphi %s1686_s18, %s2105_s18   ;;  %s1630_s17 = sphi %s1684_s17, %s2109_s17   ;;  %s1626_s16 = sphi %s1682_s16, %s2108_s16   ;;  %s1622_s15 = sphi %s1680_s15, %s2107_s15  }
   0xd   : > { %2082 = sst [smem:[#allocation16_spill]] %s1642_s20  ;;  %s1236_s22 = sadd.s32 4294967294, %s1642_s20  }
   0xe   : > { %s46_s23 = sadd.s32 1, %s1638_s19  ;;  %s57_s24 = sadd.s32 1, %s1630_s17 }
   0xf   : > { %p48_p0 = scmp.ge.s32.totalorder %s46_s23, 2  ;;  %p64_p1 = scmp.ne.s32.totalorder %s1630_s17, %s1626_s16 }
  0x10   : > { %p65_p2 = scmp.eq.s32.totalorder %s1642_s20, 0  ;;  %p70_p3 = scmp.ne.s32.totalorder %s1626_s16, %s1622_s15 }
  0x11   : > { %s2111_s23 = smov (%p48_p0, %s46_s23), 0  ;;  %p71_p5 = scmp.eq.s32.totalorder %s1711_s21, 0 }
  0x12   : > { %2083 = sst [smem:[#allocation17_spill]] %s2111_s23  ;;  %p1723_p4 = por %p65_p2, %p64_p1 }
  0x13   : > { %s50_s26 = ssub.s32 %s1638_s19, %s2111_s23  ;;  %p154_p6 = scmp.eq.s32.totalorder %s1711_s21, 1 }
  0x14   : > { %p55_p7 = scmp.eq.s32.totalorder %s50_s26, 0  ;;  %p1731_p8 = por %p71_p5, %p70_p3 }
  0x15   : > { %p1735_p9 = por %p154_p6, %p64_p1  ;;  %p160_p10 = scmp.eq.s32.totalorder %s1236_s22, 1 }
  0x16   : > { %s2085_s27 = scalar_select %p1731_p8, 1, 0 }
  0x17   : > { %s2086_s28 = scalar_select %p1735_p9, 1, 0 }
  0x18   : > { %s1740_s29 = scalar_select %p55_p7, %s1630_s17, %s57_s24  }
  0x19   : > { %p1742_p11 = por %p160_p10, %p70_p3  ;;  %p1362_p13 = scmp.lt.s32.totalorder %s1642_s20, 2 }
  0x1a   : > { %2087 = sst [smem:[#allocation18_spill]] %s1740_s29  ;;  %s2069_s5 = sand.u32 1, %s1630_s17  }
  0x1b   : > { %s2088_s30 = scalar_select %p1742_p11, 1, 0 }
  0x1c   : > { %s1751_s6 = sshll.u32 %s2069_s5, 5  ;;  %s1754_s7 = sshll.u32 %s1638_s19, 9 }
  0x1d   : > { %p1758_p0 = pnand %p1362_p13, %p1723_p4  ;;  %s234_s9 = sand.u32 1, %s1642_s20  }
  0x1e   : > { %s2090_s1 = sld [smem:[#allocation19_spill]]  ;;  %s238_s13 = scalar_lea.vmem [#allocation5], %s1751_s6 }
  0x1f   : > { %s247_s14 = sshll.u32 %s238_s13, 4  ;;  %s1774_s22 = scalar_lea.sflag [#allocation6], %s234_s9  ;;  %s1771_s14 = int_to_ptr.vmem [resolvable:$true] %s247_s14 }
  0x20   : > { %p1780_p4 = pneg %p1758_p0 }
  0x24   : > { %s1767_s12 = scalar_lea.hbm %s2090_s1, %s1754_s7  ;;  %s1439_s11 = scalar_lea.hbm %s2090_s1, 1024 }
  0x25   : > { %s1434_s24 = scalar_lea.hbm %s1767_s12, 512  ;;  %p1440_p7 = scmp.lt.u32.totalorder %s1767_s12, %s2090_s1 }
  0x26   : > { %p1435_p3 = scmp.ne.s32.totalorder %s1767_s12, %s1434_s24  ;;  %p1441_p10 = scmp.lt.u32.totalorder %s1439_s11, %s1434_s24 }
  0x27   : > { %p1443_p12 = scmp.lt.u32.totalorder %s1434_s24, %s1767_s12 }
  0x28   : > { %p1437_p5 = pnand %p1780_p4, %p1435_p3  ;;  %p1442_p13 = por %p1441_p10, %p1440_p7 }
  0x2a   : > { %p1438_p6 = pneg %p1437_p5  ;;  %p1444_p1 = por %p1443_p12, %p1442_p13 }
  0x2c   : > { %p1445_p2 = pnand %p1444_p1, %p1438_p6 }
  0x2e   : > { %1448 = shalt.err (!%p1445_p2)
}
  0x2f   : > { %s1449_s9 = scalar_lea.vmem %s1771_s14, 512  ;;  %s1644_s26 = smov [#allocation5]  }
  0x30   : > { %p1450_p3 = scmp.ne.s32.totalorder %s1771_s14, %s1449_s9  ;;  %s1454_s10 = sshll.u32 %s1644_s26, 4  ;;  %s1455_s10 = int_to_ptr.vmem [resolvable:$false] %s1454_s10 }
  0x31   : > { %s1456_s5 = scalar_lea.vmem %s1455_s10, 1024  ;;  %p1457_p9 = scmp.lt.s32.totalorder %s1771_s14, %s1455_s10 }
  0x32   : > { %p1452_p5 = pnand %p1450_p3, %p1780_p4  ;;  %p1458_p8 = scmp.lt.s32.totalorder %s1456_s5, %s1449_s9 }
  0x34   : > { %p1453_p11 = pneg %p1452_p5  ;;  %p1459_p7 = por %p1458_p8, %p1457_p9 }
  0x36   : > { %p1460_p10 = pnand %p1459_p7, %p1453_p11 }
  0x38   : > { %1463 = shalt.err (!%p1460_p10)
}
  0x39   : > { %s2072_s24 = smov 128   ;;  %s2074_s11 = smov 8  }
  0x3a   : > { %1351 = dma.hbm_to_vmem [thread:$0]  (!%p1758_p0), %s1767_s12, 512, %s1771_s14, %s1774_s22, %s2072_s24, %s2072_s24, %s2074_s11  }
  0x3b   : > { %p2092_p8 = scmp.lt.s32.totalorder %s1642_s20, 3  ;;  %p2093_p9 = scmp.ge.s32.totalorder %s1642_s20, 1 }
  0x3c   : > { %s1819_s10 = scalar_lea.hbm %s2064_s0, %s1754_s7  ;;  %s214_s5 = scalar_lea.vmem [#allocation2], %s1751_s6 }
  0x3d   : > { %p1811_p11 = pnand %p2093_p9, %p2092_p8  ;;  %s224_s1 = sshll.u32 %s214_s5, 4  ;;  %s1822_s1 = int_to_ptr.vmem [resolvable:$true] %s224_s1 }
  0x3e   : > { %s1828_s24 = scalar_lea.hbm %s2066_s2, %s1754_s7  ;;  %s2095_s11 = sand.u32 1, %s1630_s17  }
  0x3f   : > { %s2094_s13 = scalar_select %p1811_p11, 1, 0 }
  0x40   : > { %s1832_s23 = scalar_lea.sflag [#allocation3], %s2095_s11  ;;  %s1464_s19 = scalar_lea.hbm %s1819_s10, 512 }
  0x41   : > { %p1465_p12 = scmp.ne.s32.totalorder %s1819_s10, %s1464_s19  ;;  %s1469_s29 = scalar_lea.hbm %s2064_s0, 1024 }
  0x42   : > { %p1470_p6 = scmp.lt.u32.totalorder %s1819_s10, %s2064_s0  ;;  %p1471_p13 = scmp.lt.u32.totalorder %s1469_s29, %s1464_s19 }
  0x43   : > { %p1467_p1 = pnand %p1465_p12, %p1780_p4  ;;  %p1473_p5 = scmp.lt.u32.totalorder %s1464_s19, %s1819_s10 }
  0x44   : > { %p1472_p3 = por %p1471_p13, %p1470_p6 }
  0x45   : > { %p1468_p2 = pneg %p1467_p1 }
  0x46   : > { %p1474_p7 = por %p1473_p5, %p1472_p3 }
  0x48   : > { %p1475_p10 = pnand %p1474_p7, %p1468_p2 }
  0x4a   : > { %1478 = shalt.err (!%p1475_p10)
}
  0x4b   : > { %s1479_s7 = scalar_lea.vmem %s1822_s1, 512  ;;  %s1647_s11 = smov [#allocation2]  }
  0x4c   : > { %p1480_p8 = scmp.ne.s32.totalorder %s1822_s1, %s1479_s7  ;;  %s1484_s12 = sshll.u32 %s1647_s11, 4  ;;  %s1485_s12 = int_to_ptr.vmem [resolvable:$false] %s1484_s12 }
  0x4d   : > { %s1486_s20 = scalar_lea.vmem %s1485_s12, 1024  ;;  %p1487_p1 = scmp.lt.s32.totalorder %s1822_s1, %s1485_s12 }
  0x4e   : > { %p1482_p9 = pnand %p1480_p8, %p1780_p4  ;;  %p1488_p11 = scmp.lt.s32.totalorder %s1486_s20, %s1479_s7 }
  0x50   : > { %p1483_p12 = pneg %p1482_p9  ;;  %p1489_p6 = por %p1488_p11, %p1487_p1 }
  0x52   : > { %p1490_p13 = pnand %p1489_p6, %p1483_p12 }
  0x54   : > { %1493 = shalt.err (!%p1490_p13)
}
  0x55   : > { %s2096_s19 = smov 8   ;;  %s2097_s29 = smov 128  }
  0x56   : > { %1348 = dma.hbm_to_vmem [thread:$0]  (!%p1758_p0), %s1819_s10, 512, %s1822_s1, %s1832_s23, %s2097_s29, %s2097_s29, %s2096_s19  }
  0x57   : > { %s261_s14 = scalar_lea.vmem [#allocation7], %s1751_s6  ;;  %s1494_s26 = scalar_lea.hbm %s1828_s24, 512 }
  0x58   : > { %s270_s9 = sshll.u32 %s261_s14, 4  ;;  %p1495_p11 = scmp.ne.s32.totalorder %s1828_s24, %s1494_s26  ;;  %s1860_s9 = int_to_ptr.vmem [resolvable:$true] %s270_s9 }
  0x59   : > { %s1499_s11 = scalar_lea.hbm %s2066_s2, 1024  ;;  %p1500_p5 = scmp.lt.u32.totalorder %s1828_s24, %s2066_s2 }
  0x5a   : > { %p1497_p2 = pnand %p1495_p11, %p1780_p4  ;;  %p1501_p7 = scmp.lt.u32.totalorder %s1499_s11, %s1494_s26 }
  0x5b   : > { %p1503_p8 = scmp.lt.u32.totalorder %s1494_s26, %s1828_s24 }
  0x5c   : > { %p1498_p3 = pneg %p1497_p2  ;;  %p1502_p10 = por %p1501_p7, %p1500_p5 }
  0x5e   : > { %p1504_p9 = por %p1503_p8, %p1502_p10 }
  0x60   : > { %p1505_p12 = pnand %p1504_p9, %p1498_p3 }
  0x62   : > { %1508 = shalt.err (!%p1505_p12)
}
  0x63   : > { %s1509_s1 = scalar_lea.vmem %s1860_s9, 512  ;;  %s1648_s23 = smov [#allocation7]  }
  0x64   : > { %p1510_p1 = scmp.ne.s32.totalorder %s1860_s9, %s1509_s1  ;;  %s1514_s6 = sshll.u32 %s1648_s23, 4  ;;  %s1515_s6 = int_to_ptr.vmem [resolvable:$false] %s1514_s6 }
  0x65   : > { %s1516_s10 = scalar_lea.vmem %s1515_s6, 1024  ;;  %p1517_p11 = scmp.lt.s32.totalorder %s1860_s9, %s1515_s6 }
  0x66   : > { %p1512_p6 = pnand %p1510_p1, %p1780_p4  ;;  %p1518_p2 = scmp.lt.s32.totalorder %s1516_s10, %s1509_s1 }
  0x68   : > { %p1513_p13 = pneg %p1512_p6  ;;  %p1519_p5 = por %p1518_p2, %p1517_p11 }
  0x6a   : > { %p1520_p7 = pnand %p1519_p5, %p1513_p13 }
  0x6c   : > { %1523 = shalt.err (!%p1520_p7)
}
  0x6d   : > { %1354 = dma.hbm_to_vmem [thread:$0]  (!%p1758_p0), %s1828_s24, 512, %s1860_s9, %s1774_s22, %s2097_s29, %s2097_s29, %s2096_s19  }
  0x6e   : > { %p2098_p4 = scmp.ne.s32.totalorder %s2094_s13, 0 }
  0x6f   : > { %s1890_s25 = sand.u32 (!%p2098_p4), 1, %s1626_s16   ;;  %p2099_p3 = scmp.ne.s32.totalorder (!%p2098_p4), %s2085_s27, 0 }
  0x70   : > { %282 = sbr.rel (%p2098_p4) target bundleno = 891 (0x37b), region = 32  ;;  %s1893_s14 = sshll.u32 (!%p2098_p4), %s1890_s25, 5 }
  0x71   : > { %s285_s8 = scalar_lea.sflag (!%p2098_p4), [#allocation3], %s1890_s25  ;;  %s1897_s26 = scalar_lea.vmem (!%p2098_p4), [#allocation2], %s1893_s14 }
  0x77   : > { %1605 = dma.done.wait (%p2099_p3), %s285_s8, 512  }
  0x78   : > { %1607 = vsyncadd (%p2099_p3), %s285_s8, 4294966784  ;;  %s293_s22 = sand.u32 1, %s1711_s21   ;;  %s297_s13 = scalar_lea.vmem [#allocation5], %s1893_s14 }
  0x79   : > { %s294_s24 = scalar_lea.sflag [#allocation6], %s293_s22 }
  0x7a   : > { %1609 = dma.done.wait (%p2099_p3), %s294_s24, 1024  }
  0x7b   : > { %1611 = vsyncadd (%p2099_p3), %s294_s24, 4294966272  ;;  %v1649_v0 = vmov 0.0   ;;  %vm1650_vm0 = vmmov 0   ;;  %vm363_vm1 = vcmask 261120   ;;  %v355_v1 = vld [vmem:[%s297_s13] sm:$0xff]  ;;  %v356_v2 = vld [vmem:[%s297_s13 + $0x8] sm:$0xff] }
  0x7c   : > { %1295 = vmatprep.subr.mxu0 %v1649_v0  ;;  %1297 = vmatprep.mubr.msk.f32.mxu0 %vm1650_vm0, %v1649_v0  ;;  %v351_v3 = vld [vmem:[%s1897_s26] sm:$0xff]  ;;  %v352_v4 = vld [vmem:[%s1897_s26 + $0x8] sm:$0xff]  ;;  %v357_v5 = vld [vmem:[%s297_s13 + $0x10] sm:$0xff]  ;;  %vm672_vm2 = vcmask 64512   ;;  %s306_s21 = scalar_lea.vmem [#allocation7], %s1893_s14  ;;  %s345_s27 = scalar_lea.vmem [#allocation9], %s1893_s14 }
  0x7d   : > { %1300 = vmatprep.subr.mxu1 %v1649_v0  ;;  %1302 = vmatprep.mubr.msk.f32.mxu1 %vm1650_vm0, %v1649_v0  ;;  %v358_v6 = vld [vmem:[%s297_s13 + $0x18] sm:$0xff]  ;;  %v353_v7 = vld [vmem:[%s1897_s26 + $0x10] sm:$0xff]  ;;  %v359_v45 = vld [vmem:[%s306_s21] sm:$0xff]  ;;  %s1277_s19 = sshll.u32 %s1634_s18, 9  ;;  %s1058_s7 = sshll.u32 %s345_s27, 4  ;;  %s1971_s7 = int_to_ptr.vmem [resolvable:$true] %s1058_s7 }
  0x7e   : > { %1296 = vmatpush3.xpose.msk.msra.mxu0 %vm363_vm1, %v355_v1  ;;  %1301 = vmatpush3.xpose.msk.msra.mxu1 %vm363_vm1, %v356_v2  ;;  %v354_v8 = vld [vmem:[%s1897_s26 + $0x18] sm:$0xff]  ;;  %v360_v46 = vld [vmem:[%s306_s21 + $0x8] sm:$0xff]  ;;  %v361_v53 = vld [vmem:[%s306_s21 + $0x10] sm:$0xff]  ;;  %s1969_s5 = scalar_lea.hbm %s2068_s4, %s1277_s19  ;;  %s1023_s11 = scalar_lea.sflag [#allocation10], %s1890_s25 }
  0x7f   : > { %1305 = vmatprep.subr.mxu0 %v1649_v0  ;;  %1310 = vmatprep.subr.mxu1 %v1649_v0  ;;  %v362_v57 = vld [vmem:[%s306_s21 + $0x18] sm:$0xff]  ;;  %s1524_s12 = scalar_lea.vmem %s1971_s7, 512  ;;  %p2100_p10 = scmp.ne.s32.totalorder %s2086_s28, 0 }
  0x80   : > { %p1525_p0 = scmp.ne.s32.totalorder %s1971_s7, %s1524_s12  ;;  %s1651_s20 = smov [#allocation9]  }
  0x81   : > { %1298 = vmatmul.mubr.msk.f32.vlgmr.msra.gmra.mrb[0].mxu0 %vm363_vm1, %v351_v3  ;;  %1303 = vmatmul.mubr.msk.f32.vlgmr.msra.gmra.mrb[0].mxu1 %vm363_vm1, %v352_v4  ;;  %s1528_s1 = sshll.u32 %s1651_s20, 4  ;;  %s1529_s1 = int_to_ptr.vmem [resolvable:$false] %s1528_s1 }
  0x82   : > { %1306 = vmatpush3.xpose.msk.msra.mxu0 %vm363_vm1, %v357_v5  ;;  %1307 = vmatprep.mubr.msk.f32.mxu0 %vm1650_vm0, %v1649_v0  ;;  %p1526_p8 = pnand %p1525_p0, %p2100_p10  ;;  %s1530_s23 = scalar_lea.vmem %s1529_s1, 1024 }
  0x83   : > { %1311 = vmatpush3.xpose.msk.msra.mxu1 %vm363_vm1, %v358_v6  ;;  %1312 = vmatprep.mubr.msk.f32.mxu1 %vm1650_vm0, %v1649_v0  ;;  %p1531_p12 = scmp.lt.s32.totalorder %s1971_s7, %s1529_s1  ;;  %p1532_p1 = scmp.lt.s32.totalorder %s1530_s23, %s1524_s12 }
  0x84   : > { %1315 = vmatprep.subr.mxu0 %v1649_v0  ;;  %1320 = vmatprep.subr.mxu1 %v1649_v0  ;;  %p1527_p9 = pneg %p1526_p8 }
  0x85   : > { %1308 = vmatmul.mubr.msk.f32.vlgmr.msra.gmra.mrb[2].mxu0 %vm363_vm1, %v353_v7  ;;  %p1533_p6 = por %p1532_p1, %p1531_p12 }
  0x86   : > { %1313 = vmatmul.mubr.msk.f32.vlgmr.msra.gmra.mrb[2].mxu1 %vm363_vm1, %v354_v8  ;;  %1317 = vmatprep.mubr.msk.f32.mxu0 %vm1650_vm0, %v1649_v0 }
  0x87   : > { %1322 = vmatprep.mubr.msk.f32.mxu1 %vm1650_vm0, %v1649_v0  ;;  %1316 = vmatpush3.msra.mxu0 %v359_v45  ;;  %p1534_p13 = pnand %p1533_p6, %p1527_p9 }
  0x88   : > { %1325 = vmatprep.subr.mxu0 %v1649_v0  ;;  %1321 = vmatpush3.msra.mxu1 %v360_v46 }
  0x89   : > { %1330 = vmatprep.subr.mxu1 %v1649_v0 }
 0x154   : > { %v436_v9 = vpop.f32.mrb[0].mxu0  ;;  %v512_v10 = vpop.f32.mrb[0].mxu1 }
 0x155   : > { %v668_v11 = vmul.f32 0.17677669, %v436_v9  ;;  %v1299_v12 = vpop.f32.mrb[1].mxu0  ;;  %v669_v13 = vmul.f32 0.17677669, %v512_v10  ;;  %v1304_v14 = vpop.f32.mrb[1].mxu1 }
 0x157   : > { %v673_v15 = vsel %vm672_vm2, %v668_v11, -inf  ;;  %v676_v20 = vsel %vm672_vm2, %v669_v13, -inf }
 0x158   : > { %674 = vmax.xlane.f32.xlu0 %v673_v15  ;;  %v588_v16 = vpop.f32.mrb[2].mxu0 }
 0x159   : > { %v670_v17 = vmul.f32 0.17677669, %v588_v16  ;;  %v1309_v18 = vpop.f32.mrb[3].mxu0  ;;  %v664_v19 = vpop.f32.mrb[2].mxu1 }
 0x15a   : > { %v671_v21 = vmul.f32 0.17677669, %v664_v19  ;;  %v1314_v22 = vpop.f32.mrb[3].mxu1 }
 0x15b   : > { %v679_v23 = vsel %vm672_vm2, %v670_v17, -inf }
 0x15c   : > { %677 = vmax.xlane.f32.xlu0 %v676_v20  ;;  %680 = vmax.xlane.f32.xlu1 %v679_v23  ;;  %v682_v24 = vsel %vm672_vm2, %v671_v21, -inf }
 0x160   : > { %683 = vmax.xlane.f32.xlu1 %v682_v24 }
 0x1e5   : > { %v675_v25 = vpop.xlane.xlu0 %674 }
 0x1e6   : > { %v685_v26 = vsub.f32 %v668_v11, %v675_v25 }
 0x1e8   : > { %v689_v27 = vmul.f32 1.442695, %v685_v26 }
 0x1e9   : > { %v678_v28 = vpop.xlane.xlu0 %677  ;;  %v681_v29 = vpop.xlane.xlu1 %680 }
 0x1ea   : > { %1418 = vpow2.f32 %v689_v27  ;;  %v686_v30 = vsub.f32 %v669_v13, %v678_v28  ;;  %v687_v31 = vsub.f32 %v670_v17, %v681_v29 }
 0x1ec   : > { %v691_v32 = vmul.f32 1.442695, %v686_v30  ;;  %v693_v33 = vmul.f32 1.442695, %v687_v31 }
 0x1ed   : > { %v684_v34 = vpop.xlane.xlu1 %683 }
 0x1ee   : > { %1420 = vpow2.f32 %v691_v32  ;;  %v688_v35 = vsub.f32 %v671_v21, %v684_v34 }
 0x1ef   : > { %1422 = vpow2.f32 %v693_v33 }
 0x1f0   : > { %v695_v36 = vmul.f32 1.442695, %v688_v35 }
 0x1f2   : > { %1424 = vpow2.f32 %v695_v36 }
 0x1f4   : > { %v1419_v37 = vpop.eup %1418 }
 0x1f5   : > { %v697_v38 = vsel %vm672_vm2, %v1419_v37, 0.0 }
 0x1f6   : > { %698 = vadd.xlane.f32.xlu0 %v697_v38 }
 0x1f8   : > { %v1421_v39 = vpop.eup %1420 }
 0x1f9   : > { %v1423_v40 = vpop.eup %1422  ;;  %v700_v41 = vsel %vm672_vm2, %v1421_v39, 0.0 }
 0x1fa   : > { %701 = vadd.xlane.f32.xlu1 %v700_v41  ;;  %v703_v42 = vsel %vm672_vm2, %v1423_v40, 0.0 }
 0x1fb   : > { %704 = vadd.xlane.f32.xlu0 %v703_v42 }
 0x1fc   : > { %v1425_v43 = vpop.eup %1424 }
 0x1fd   : > { %v706_v44 = vsel %vm672_vm2, %v1425_v43, 0.0 }
 0x1fe   : > { %707 = vadd.xlane.f32.xlu1 %v706_v44 }
 0x283   : > { %v699_v47 = vpop.xlane.xlu0 %698 }
 0x284   : > { %1426 = vrcp.f32 %v699_v47 }
 0x287   : > { %v702_v48 = vpop.xlane.xlu1 %701 }
 0x288   : > { %v705_v49 = vpop.xlane.xlu0 %704  ;;  %1428 = vrcp.f32 %v702_v48 }
 0x289   : > { %1430 = vrcp.f32 %v705_v49 }
 0x28b   : > { %v708_v50 = vpop.xlane.xlu1 %707 }
 0x28c   : > { %1432 = vrcp.f32 %v708_v50 }
 0x28e   : > { %v1427_v51 = vpop.eup %1426 }
 0x28f   : > { %v713_v52 = vmul.f32 %v1427_v51, %v1419_v37 }
 0x291   : > { %1013 = vst.msk [vmem:[%s345_s27] sm:$0xff] %vm672_vm2, %v713_v52  ;;  %1318 = vmatmul.mubr.msk.f32.vlgmr.msra.gmra.mrb[4].mxu0 %vm672_vm2, %v713_v52 }
 0x292   : > { %v1429_v54 = vpop.eup %1428  ;;  %1326 = vmatpush3.msra.mxu0 %v361_v53  ;;  %1327 = vmatprep.mubr.msk.f32.mxu0 %vm1650_vm0, %v1649_v0 }
 0x293   : > { %v1431_v55 = vpop.eup %1430  ;;  %v714_v56 = vmul.f32 %v1429_v54, %v1421_v39 }
 0x294   : > { %v715_v58 = vmul.f32 %v1431_v55, %v1423_v40 }
 0x295   : > { %1014 = vst.msk [vmem:[%s345_s27 + $0x8] sm:$0xff] %vm672_vm2, %v714_v56  ;;  %1323 = vmatmul.mubr.msk.f32.vlgmr.msra.gmra.mrb[4].mxu1 %vm672_vm2, %v714_v56 }
 0x296   : > { %v1433_v59 = vpop.eup %1432  ;;  %1015 = vst.msk [vmem:[%s345_s27 + $0x10] sm:$0xff] %vm672_vm2, %v715_v58  ;;  %1328 = vmatmul.mubr.msk.f32.vlgmr.msra.gmra.mrb[6].mxu0 %vm672_vm2, %v715_v58  ;;  %1331 = vmatpush3.msra.mxu1 %v362_v57 }
 0x297   : > { %v716_v60 = vmul.f32 %v1433_v59, %v1425_v43  ;;  %1332 = vmatprep.mubr.msk.f32.mxu1 %vm1650_vm0, %v1649_v0 }
 0x299   : > { %1016 = vst.msk [vmem:[%s345_s27 + $0x18] sm:$0xff] %vm672_vm2, %v716_v60  ;;  %1333 = vmatmul.mubr.msk.f32.vlgmr.msra.gmra.mrb[6].mxu1 %vm672_vm2, %v716_v60 }
 0x29a   : > { %1537 = shalt.err (!%p1534_p13)
}
 0x29b   : > { %s1538_s6 = scalar_lea.hbm %s1969_s5, 512  ;;  %s1542_s26 = scalar_lea.hbm %s2068_s4, 1024 }
 0x29c   : > { %p1539_p11 = scmp.ne.s32.totalorder %s1969_s5, %s1538_s6  ;;  %p1543_p7 = scmp.lt.u32.totalorder %s1969_s5, %s2068_s4 }
 0x29d   : > { %p1544_p4 = scmp.lt.u32.totalorder %s1542_s26, %s1538_s6  ;;  %p1546_p0 = scmp.lt.u32.totalorder %s1538_s6, %s1969_s5 }
 0x29e   : > { %p1540_p2 = pnand %p1539_p11, %p2100_p10 }
 0x29f   : > { %p1545_p3 = por %p1544_p4, %p1543_p7 }
 0x2a0   : > { %p1541_p5 = pneg %p1540_p2 }
 0x2a1   : > { %p1547_p8 = por %p1546_p0, %p1545_p3 }
 0x2a3   : > { %p1548_p9 = pnand %p1547_p8, %p1541_p5 }
 0x2a5   : > { %1551 = shalt.err (!%p1548_p9)
}
 0x2a6   : > { %s1652_s13 = smov 128   ;;  %s1653_s21 = smov 8  }
 0x2a7   : > { %1342 = dma.vmem_to_hbm [thread:$0]  (%p2100_p10), %s1971_s7, 512, %s1969_s5, %s1023_s11, %s1652_s13, %s1652_s13, %s1653_s21  }
 0x2a8   : > { %s338_s27 = scalar_lea.vmem [#allocation8], %s1893_s14  ;;  %s2011_s5 = scalar_lea.hbm %s2067_s3, %s1277_s19 }
 0x2a9   : > { %s1039_s29 = sshll.u32 %s338_s27, 4  ;;  %s1018_s7 = scalar_lea.sflag [#allocation4], %s1890_s25  ;;  %s2003_s29 = int_to_ptr.vmem [resolvable:$true] %s1039_s29 }
 0x2aa   : > { %s1552_s11 = scalar_lea.vmem %s2003_s29, 512  ;;  %s1654_s12 = smov [#allocation8]  }
 0x2ab   : > { %p1553_p12 = scmp.ne.s32.totalorder %s2003_s29, %s1552_s11  ;;  %s1556_s20 = sshll.u32 %s1654_s12, 4  ;;  %s1557_s20 = int_to_ptr.vmem [resolvable:$false] %s1556_s20 }
 0x2ac   : > { %s1558_s1 = scalar_lea.vmem %s1557_s20, 1024  ;;  %p1559_p13 = scmp.lt.s32.totalorder %s2003_s29, %s1557_s20 }
 0x2ad   : > { %p1554_p1 = pnand %p1553_p12, %p2100_p10  ;;  %p1560_p11 = scmp.lt.s32.totalorder %s1558_s1, %s1552_s11 }
 0x2af   : > { %p1555_p6 = pneg %p1554_p1  ;;  %p1561_p2 = por %p1560_p11, %p1559_p13 }
 0x2b1   : > { %p1562_p5 = pnand %p1561_p2, %p1555_p6 }
 0x364   : > { %v786_v61 = vpop.f32.mrb[4].mxu0 }
 0x365   : > { %1009 = vst.msk [vmem:[%s338_s27] sm:$0xff] %vm363_vm1, %v786_v61  ;;  %v1319_v62 = vpop.f32.mrb[5].mxu0 }
 0x368   : > { %v859_v63 = vpop.f32.mrb[4].mxu1 }
 0x369   : > { %1010 = vst.msk [vmem:[%s338_s27 + $0x8] sm:$0xff] %vm363_vm1, %v859_v63  ;;  %v932_v0 = vpop.f32.mrb[6].mxu0  ;;  %v1324_v1 = vpop.f32.mrb[5].mxu1 }
 0x36a   : > { %1011 = vst.msk [vmem:[%s338_s27 + $0x10] sm:$0xff] %vm363_vm1, %v932_v0  ;;  %v1329_v2 = vpop.f32.mrb[7].mxu0 }
 0x36c   : > { %v1005_v3 = vpop.f32.mrb[6].mxu1 }
 0x36d   : > { %1012 = vst.msk [vmem:[%s338_s27 + $0x18] sm:$0xff] %vm363_vm1, %v1005_v3  ;;  %v1334_v4 = vpop.f32.mrb[7].mxu1 }
 0x36e   : > { %1565 = shalt.err (!%p1562_p5)
}
 0x36f   : > { %s1566_s18 = scalar_lea.hbm %s2011_s5, 512  ;;  %s1570_s6 = scalar_lea.hbm %s2067_s3, 1024 }
 0x370   : > { %p1567_p7 = scmp.ne.s32.totalorder %s2011_s5, %s1566_s18  ;;  %p1571_p0 = scmp.lt.u32.totalorder %s2011_s5, %s2067_s3 }
 0x371   : > { %p1572_p8 = scmp.lt.u32.totalorder %s1570_s6, %s1566_s18  ;;  %p1574_p12 = scmp.lt.u32.totalorder %s1566_s18, %s2011_s5 }
 0x372   : > { %p1568_p4 = pnand %p1567_p7, %p2100_p10 }
 0x373   : > { %p1573_p9 = por %p1572_p8, %p1571_p0 }
 0x374   : > { %p1569_p3 = pneg %p1568_p4 }
 0x375   : > { %p1575_p1 = por %p1574_p12, %p1573_p9 }
 0x377   : > { %p1576_p6 = pnand %p1575_p1, %p1569_p3 }
 0x379   : > { %1579 = shalt.err (!%p1576_p6)
}
 0x37a   : > { %1341 = dma.vmem_to_hbm [thread:$0]  (%p2100_p10), %s2003_s29, 512, %s2011_s5, %s1018_s7, %s1652_s13, %s1652_s13, %s1653_s21  }
 0x37b PF: > { %s2101_s26 = sld [smem:[#allocation16_spill]]  ;;  %s1073_s22 = sand.u32 1, %s1622_s15  }
 0x37c   : > { %p2102_p13 = scmp.ne.s32.totalorder %s2088_s30, 0  ;;  %s1074_s24 = scalar_lea.sflag [#allocation4], %s1073_s22 }
 0x381   : > { %p2103_p11 = scmp.ge.s32.totalorder %s2101_s26, 2 }
 0x383   : > { %p1356_p2 = pnand %p2103_p11, %p2102_p13 }
 0x385   : > { %1613 = dma.done.wait (!%p1356_p2), %s1074_s24, 512  }
 0x386   : > { %1615 = vsyncadd (!%p1356_p2), %s1074_s24, 4294966784  ;;  %s1083_s28 = scalar_lea.sflag [#allocation10], %s1073_s22 }
 0x387   : > { %1617 = dma.done.wait (!%p1356_p2), %s1083_s28, 512  }
 0x388   : > { %1619 = vsyncadd (!%p1356_p2), %s1083_s28, 4294966784  ;;  %s27_s20 = sadd.s32 1, %s2101_s26   ;;  %s2104_s25 = sld [smem:[#allocation18_spill]] }
 0x389   : > { %p24_p5 = scmp.ge.s32.totalorder %s27_s20, 4   ;;  %s2105_s18 = sld [smem:[#allocation15_spill]] }
 0x38a   : > { %s2106_s19 = sld [smem:[#allocation17_spill]]  ;;  %s2107_s15 = smov %s1626_s16 }
 0x38b   : > { %s2108_s16 = smov %s1630_s17  ;;  %26 = sbr.rel (!%p24_p5) target bundleno = 12 (0xc), region = 118 }
 0x38e   : > { %s2109_s17 = smov %s2104_s25 }
 0x392   :  { %1088 = vsyncpa [#allocation3], 1 }
 0x393   :  { %1090 = vsyncpa [#allocation3 + $0x1], 1 }
 0x394   :  { %1091 = vsyncpa [#allocation6], 1 }
 0x395   :  { %1093 = vsyncpa [#allocation6 + $0x1], 1 }
 0x396   :  { %1094 = vsyncpa [#allocation4], 1 }
 0x397   :  { %1096 = vsyncpa [#allocation4 + $0x1], 1 }
 0x398   :  { %1097 = vsyncpa [#allocation10], 1 }
 0x399   :  { %1099 = vsyncpa [#allocation10 + $0x1], 1 }

</bundles_post_ra>
